<compile_context>
chip_gen: v5e
topology: v5e:2x2
jax: 0.10.0
libtpu: 0.0.40
codegen_flags: <defaults>
</compile_context>

<pallas_src>
import jax
import jax.numpy as jnp
from jax import lax
from jax.experimental import pallas as pl
from jax.experimental.pallas import tpu as pltpu  # noqa: F401 (kept for the large-config fallback)


# ---------------------------------------------------------------------------
# Fused kernel: all layers in one invocation, weights resident in VMEM.
# ---------------------------------------------------------------------------
def make_fused_mlp_kernel(num_layers):
    def kernel(x_ref, w_ref, b_ref, o_ref):
        h0 = x_ref[...].astype(jnp.float32)

        def layer(l, h):
            # bf16 x bf16 -> f32 accumulate on the MXU; bias/ReLU stay in f32.
            y = jnp.dot(h.astype(w_ref.dtype), w_ref[l],
                        preferred_element_type=jnp.float32)
            return jnp.maximum(y + b_ref[l], 0.0)

        h = lax.fori_loop(0, num_layers, layer, h0, unroll=True)
        o_ref[...] = h.astype(o_ref.dtype)

    return kernel


def fused_forward(x, w_stack, b_stack):
    """x: (M, D) f32.  w_stack: (L, D, D) bf16, pre-transposed (in, out).
    b_stack: (L, 1, D) f32."""
    L, D, _ = w_stack.shape
    M, Dx = x.shape
    assert Dx == D, "input feature dim must match the layer dim"

    cost = pl.CostEstimate(
        flops=2 * L * M * D * D,
        transcendentals=0,
        bytes_accessed=(x.size * x.dtype.itemsize
                        + w_stack.size * w_stack.dtype.itemsize
                        + b_stack.size * b_stack.dtype.itemsize
                        + M * D * x.dtype.itemsize),
    )

    return pl.pallas_call(
        make_fused_mlp_kernel(L),
        out_shape=jax.ShapeDtypeStruct((M, D), x.dtype),
        in_specs=[
            pl.BlockSpec((M, D), lambda: (0, 0)),          # activation (full array)
            pl.BlockSpec((L, D, D), lambda: (0, 0, 0)),    # whole weight stack
            pl.BlockSpec((L, 1, D), lambda: (0, 0, 0)),    # whole bias stack
        ],
        out_specs=pl.BlockSpec((M, D), lambda: (0, 0)),
        cost_estimate=cost,
    )(x, w_stack, b_stack)


# ---------------------------------------------------------------------------
# Parameter init (mirrors nn.Linear: weight (out, in), bias (out,)) + packing.
# ---------------------------------------------------------------------------
def init_params(key, layers, dim, dtype=jnp.float32):
    params = []
    for li in range(layers):
        kw, kb, key = jax.random.split(jax.random.fold_in(key, li), 3)
        bound = 1.0 / jnp.sqrt(dim)
        w = jax.random.uniform(kw, (dim, dim), dtype, -bound, bound)   # (out, in)
        b = jax.random.uniform(kb, (dim,), dtype, -bound, bound)       # (out,)
        params.append((w, b))
    return params


def pack_params(params, w_dtype=jnp.bfloat16):
    """One-time packing: transpose to (in, out), cast weights to bf16, stack."""
    w_stack = jnp.stack([w.T.astype(w_dtype) for w, _ in params])           # (L, D, D)
    b_stack = jnp.stack([b.astype(jnp.float32)[None, :] for _, b in params])  # (L, 1, D)
    return w_stack, b_stack


def dummy_model_forward(x, w_stack, b_stack):
    """Equivalent of DummyModel.forward: sequential Linear->ReLU blocks (fused)."""
    return fused_forward(x, w_stack, b_stack)


if __name__ == "__main__":
    layers, dim, batch = 3, 32, 8
    key = jax.random.PRNGKey(0)
    kx, kp = jax.random.split(key)
    x = jax.random.normal(kx, (batch, dim), jnp.float32)

    raw_params = init_params(kp, layers, dim)
    w_stack, b_stack = pack_params(raw_params)            # hoisted out of hot path

    fwd = jax.jit(dummy_model_forward)
    out = jax.block_until_ready(fwd(x, w_stack, b_stack))

    # Reference in plain JAX with the same bf16 weight/activation quantization
    # the kernel uses (relu(x @ W.T + b) per layer, f32 accumulation).
    ref = x.astype(jnp.float32)
    for w, b in raw_params:
        wt = w.T.astype(jnp.bfloat16)
        ref = jnp.maximum(
            jnp.dot(ref.astype(jnp.bfloat16), wt,
                    preferred_element_type=jnp.float32) + b,
            0.0)

    assert out.shape == (batch, dim)
    assert jnp.allclose(out, ref, atol=2e-2, rtol=2e-2)

    print("KERNEL_OK")
</pallas_src>

<mosaic_0001>
module attributes {stable_mosaic.version = 11 : i64} {
  func.func @kernel(%arg0: memref<8x32xf32, #tpu.memory_space<vmem>>, %arg1: memref<3x32x32xbf16, #tpu.memory_space<vmem>>, %arg2: memref<3x1x32xf32, #tpu.memory_space<vmem>>, %arg3: memref<8x32xf32, #tpu.memory_space<vmem>>) attributes {dimension_semantics = [], scalar_prefetch = 0 : i64, scratch_operands = 0 : i64, tpu.core_type = #tpu.core_type<tc>} {
    %c0 = arith.constant 0 : index
    %c0_0 = arith.constant 0 : index
    %0 = vector.load %arg0[%c0, %c0_0] : memref<8x32xf32, #tpu.memory_space<vmem>>, vector<8x32xf32>
    %c0_i32 = arith.constant 0 : i32
    %1 = arith.truncf %0 : vector<8x32xf32> to vector<8x32xbf16>
    %2 = arith.index_cast %c0_i32 : i32 to index
    %c0_1 = arith.constant 0 : index
    %c0_2 = arith.constant 0 : index
    %3 = vector.load %arg1[%2, %c0_1, %c0_2] : memref<3x32x32xbf16, #tpu.memory_space<vmem>>, vector<1x32x32xbf16>
    %4 = vector.shape_cast %3 : vector<1x32x32xbf16> to vector<32x32xbf16>
    %cst = arith.constant dense<0.000000e+00> : vector<8x32xf32>
    %5 = tpu.matmul %1, %4, %cst {dimension_numbers = #tpu.dot_dimension_numbers<[1], [0], [0], [1], [0, 0, 1, 1], [], []>} : vector<8x32xbf16>, vector<32x32xbf16>, vector<8x32xf32> -> vector<8x32xf32>
    %6 = arith.index_cast %c0_i32 : i32 to index
    %c0_3 = arith.constant 0 : index
    %c0_4 = arith.constant 0 : index
    %7 = vector.load %arg2[%6, %c0_3, %c0_4] : memref<3x1x32xf32, #tpu.memory_space<vmem>>, vector<1x1x32xf32>
    %8 = vector.shape_cast %7 : vector<1x1x32xf32> to vector<1x32xf32>
    %9 = vector.broadcast %8 : vector<1x32xf32> to vector<8x32xf32>
    %10 = arith.addf %5, %9 : vector<8x32xf32>
    %cst_5 = arith.constant 0.000000e+00 : f32
    %11 = vector.broadcast %cst_5 : f32 to vector<8x32xf32>
    %12 = arith.maximumf %10, %11 : vector<8x32xf32>
    %c1_i32 = arith.constant 1 : i32
    %13 = arith.truncf %12 : vector<8x32xf32> to vector<8x32xbf16>
    %14 = arith.index_cast %c1_i32 : i32 to index
    %c0_6 = arith.constant 0 : index
    %c0_7 = arith.constant 0 : index
    %15 = vector.load %arg1[%14, %c0_6, %c0_7] : memref<3x32x32xbf16, #tpu.memory_space<vmem>>, vector<1x32x32xbf16>
    %16 = vector.shape_cast %15 : vector<1x32x32xbf16> to vector<32x32xbf16>
    %cst_8 = arith.constant dense<0.000000e+00> : vector<8x32xf32>
    %17 = tpu.matmul %13, %16, %cst_8 {dimension_numbers = #tpu.dot_dimension_numbers<[1], [0], [0], [1], [0, 0, 1, 1], [], []>} : vector<8x32xbf16>, vector<32x32xbf16>, vector<8x32xf32> -> vector<8x32xf32>
    %18 = arith.index_cast %c1_i32 : i32 to index
    %c0_9 = arith.constant 0 : index
    %c0_10 = arith.constant 0 : index
    %19 = vector.load %arg2[%18, %c0_9, %c0_10] : memref<3x1x32xf32, #tpu.memory_space<vmem>>, vector<1x1x32xf32>
    %20 = vector.shape_cast %19 : vector<1x1x32xf32> to vector<1x32xf32>
    %21 = vector.broadcast %20 : vector<1x32xf32> to vector<8x32xf32>
    %22 = arith.addf %17, %21 : vector<8x32xf32>
    %cst_11 = arith.constant 0.000000e+00 : f32
    %23 = vector.broadcast %cst_11 : f32 to vector<8x32xf32>
    %24 = arith.maximumf %22, %23 : vector<8x32xf32>
    %c2_i32 = arith.constant 2 : i32
    %25 = arith.truncf %24 : vector<8x32xf32> to vector<8x32xbf16>
    %26 = arith.index_cast %c2_i32 : i32 to index
    %c0_12 = arith.constant 0 : index
    %c0_13 = arith.constant 0 : index
    %27 = vector.load %arg1[%26, %c0_12, %c0_13] : memref<3x32x32xbf16, #tpu.memory_space<vmem>>, vector<1x32x32xbf16>
    %28 = vector.shape_cast %27 : vector<1x32x32xbf16> to vector<32x32xbf16>
    %cst_14 = arith.constant dense<0.000000e+00> : vector<8x32xf32>
    %29 = tpu.matmul %25, %28, %cst_14 {dimension_numbers = #tpu.dot_dimension_numbers<[1], [0], [0], [1], [0, 0, 1, 1], [], []>} : vector<8x32xbf16>, vector<32x32xbf16>, vector<8x32xf32> -> vector<8x32xf32>
    %30 = arith.index_cast %c2_i32 : i32 to index
    %c0_15 = arith.constant 0 : index
    %c0_16 = arith.constant 0 : index
    %31 = vector.load %arg2[%30, %c0_15, %c0_16] : memref<3x1x32xf32, #tpu.memory_space<vmem>>, vector<1x1x32xf32>
    %32 = vector.shape_cast %31 : vector<1x1x32xf32> to vector<1x32xf32>
    %33 = vector.broadcast %32 : vector<1x32xf32> to vector<8x32xf32>
    %34 = arith.addf %29, %33 : vector<8x32xf32>
    %cst_17 = arith.constant 0.000000e+00 : f32
    %35 = vector.broadcast %cst_17 : f32 to vector<8x32xf32>
    %36 = arith.maximumf %34, %35 : vector<8x32xf32>
    %c3_i32 = arith.constant 3 : i32
    %c0_18 = arith.constant 0 : index
    %c0_19 = arith.constant 0 : index
    %37 = vector.load %arg3[%c0_18, %c0_19] : memref<8x32xf32, #tpu.memory_space<vmem>>, vector<8x32xf32>
    tpu.vector_store %arg3[%c0_18, %c0_19], %36 {strides = array<i32>} : memref<8x32xf32, #tpu.memory_space<vmem>>, vector<8x32xf32>,
    return
  }
}

</mosaic_0001>

<bundles_post_ra>
// kernel: dummy_model_forward.1
= control target key start
LH: loop header
LB: loop body
LE: loop exit
PB: predicated region body
PF: predicated region fallthrough
CT: control target
= control target key end

     0   :  { %8 = vsyncpa [#allocation3], 0  ;;  %s390_s0 = inlined_call_operand.hbm [shape: f32[8,32], index: 0, kind: input, shape index: {}]   ;;  %s391_s1 = inlined_call_operand.hbm [shape: bf16[3,32,32], index: 1, kind: input, shape index: {}]   ;;  %s392_s2 = inlined_call_operand.hbm [shape: f32[3,1,32], index: 2, kind: input, shape index: {}]   ;;  %s393_s3 = inlined_call_operand.hbm [shape: f32[8,32], index: 3, kind: output, shape index: {}]  }
   0x1   :  { %9 = vsyncpa [#allocation6], 0  ;;  %s26_s14 = sshll.u32 %s391_s1, 4  ;;  %s27_s14 = int_to_ptr.hbm [resolvable:$true] %s26_s14 }
   0x2   :  { %10 = vsyncpa [#allocation4], 0  ;;  %s346_s15 = smov [#allocation5]   ;;  %s16_s19 = sshll.u32 %s390_s0, 4  ;;  %s17_s19 = int_to_ptr.hbm [resolvable:$true] %s16_s19 }
   0x3   :  { %s28_s16 = sshll.u32 %s346_s15, 4  ;;  %s347_s20 = smov 64   ;;  %s29_s16 = int_to_ptr.vmem [resolvable:$true] %s28_s16 }
   0x4   :  { %s348_s21 = smov 4   ;;  %s349_s22 = smov [#allocation2]  }
   0x5   :  { %34 = dma.hbm_to_vmem [thread:$0]  %s27_s14, 768, %s29_s16, [#allocation6], %s347_s20, %s347_s20, %s348_s21  }
   0x6   :  { %s18_s23 = sshll.u32 %s349_s22, 4  ;;  %s39_s26 = sshll.u32 %s392_s2, 4  ;;  %s19_s23 = int_to_ptr.vmem [resolvable:$true] %s18_s23  ;;  %s40_s26 = int_to_ptr.hbm [resolvable:$true] %s39_s26 }
   0x7   :  { %21 = dma.hbm_to_vmem [thread:$0]  %s17_s19, 128, %s19_s23, [#allocation3]  }
   0x8   :  { %s350_s1 = smov [#allocation7]   ;;  %s351_s28 = smov 16  }
   0x9   :  { %s41_s27 = sshll.u32 %s350_s1, 4  ;;  %s352_s29 = smov 1   ;;  %s42_s27 = int_to_ptr.vmem [resolvable:$true] %s41_s27 }
   0xa   :  { %47 = dma.hbm_to_vmem [thread:$0]  %s40_s26, 48, %s42_s27, [#allocation6], %s351_s28, %s351_s28, %s352_s29  }
   0xb   :  { %340 = dma.done.wait [#allocation3], 128  }
   0xc   :  { %341 = vsyncadd [#allocation3], 4294967168 }
   0xd   :  { %342 = dma.done.wait [#allocation6], 816  }
   0xe   :  { %343 = vsyncadd [#allocation6], 4294966480  ;;  %v228_v0 = vld [vmem:[#allocation5 + $0x8] sm:$0xff]  ;;  %v227_v1 = vld [vmem:[#allocation5] sm:$0xff]  ;;  %vm83_vm0 = vcmask 261120   ;;  %s353_s0 = smov [#allocation8]  }
   0xf   :  { %93 = vmatpush.bf16.msra.mxu0 %v228_v0  ;;  %v61_v2 = vld [vmem:[#allocation2] sm:$0xff]  ;;  %v229_v5 = vld [vmem:[#allocation5 + $0x10] sm:$0xff]  ;;  %v232_v12 = vld [vmem:[#allocation5 + $0x28] sm:$0xff]  ;;  %s187_s2 = sshll.u32 %s353_s0, 4  ;;  %s189_s5 = sshll.u32 %s393_s3, 4  ;;  %s188_s2 = int_to_ptr.vmem [resolvable:$true] %s187_s2  ;;  %s190_s5 = int_to_ptr.hbm [resolvable:$true] %s189_s5 }
  0x10   :  { %v62_v3 = vpack.c.bf16 %v61_v2, %v61_v2  ;;  %v230_v4 = vld [vmem:[#allocation5 + $0x18] sm:$0xff]  ;;  %v241_v6 = vld [vmem:[#allocation7] ss:$0 sm:$0xff]  ;;  %173 = vmatpush.bf16.msra.mxu2 %v232_v12  ;;  %v231_v13 = vld [vmem:[#allocation5 + $0x20] sm:$0xff] }
  0x11   :  { %133 = vmatpush.bf16.msra.mxu1 %v230_v4  ;;  %v242_v14 = vld [vmem:[#allocation7 + $0x1] ss:$0 sm:$0xff]  ;;  %v243_v20 = vld [vmem:[#allocation7 + $0x2] ss:$0 sm:$0xff] }
  0x13   :  { %94 = vmatpush.bf16.msra.mxu0 %v227_v1 }
  0x14   :  { %174 = vmatpush.bf16.msra.mxu2 %v231_v13 }
  0x15   :  { %134 = vmatpush.bf16.msra.mxu1 %v229_v5 }
  0x16   :  { %208 = vmatmul.msk.bf16.vlgmr.msra.gmra.mxu0 %vm83_vm0, %v62_v3 }
  0x93   :  { %v96_v7 = vpop.f32.mrf.mxu0 }
  0x94   :  { %v97_v8 = vadd.f32 %v241_v6, %v96_v7 }
  0x96   :  { %v100_v9 = vmax.f32 %v97_v8, 0.0 }
  0x98   :  { %v101_v10 = vpack.c.bf16 %v100_v9, %v100_v9 }
  0x9a   :  { %217 = vmatmul.msk.bf16.vlgmr.msra.gmra.mxu1 %vm83_vm0, %v101_v10 }
  0x9b   :  { %v98_v11 = vpop.f32.mrf.mxu0 }
 0x117   :  { %v136_v15 = vpop.f32.mrf.mxu1 }
 0x118   :  { %v137_v16 = vadd.f32 %v242_v14, %v136_v15 }
 0x11a   :  { %v140_v17 = vmax.f32 %v137_v16, 0.0 }
 0x11c   :  { %v141_v18 = vpack.c.bf16 %v140_v17, %v140_v17 }
 0x11e   :  { %226 = vmatmul.msk.bf16.vlgmr.msra.gmra.mxu2 %vm83_vm0, %v141_v18 }
 0x11f   :  { %v138_v19 = vpop.f32.mrf.mxu1 }
 0x1a1   :  { %v176_v21 = vpop.f32.mrf.mxu2 }
 0x1a2   :  { %v177_v22 = vadd.f32 %v243_v20, %v176_v21 }
 0x1a4   :  { %v180_v23 = vmax.f32 %v177_v22, 0.0 }
 0x1a6   :  { %181 = vst.msk [vmem:[#allocation8] sm:$0xff] %vm83_vm0, %v180_v23 }
 0x1a7   :  { %192 = dma.vmem_to_hbm [thread:$0]  %s188_s2, 128, %s190_s5, [#allocation4]  }
 0x1a9   :  { %v178_v24 = vpop.f32.mrf.mxu2 }
 0x1aa   :  { %344 = dma.done.wait [#allocation4], 128  }
 0x1ab   :  { %345 = vsyncadd [#allocation4], 4294967168 }
 0x1ac   :  { %197 = vsyncpa [#allocation3], 1 }
 0x1ad   :  { %198 = vsyncpa [#allocation6], 1 }
 0x1ae   :  { %199 = vsyncpa [#allocation4], 1 }

</bundles_post_ra>
